<compile_context>
chip_gen: v6e
topology: v6e:2x2x1
jax: 0.10.0
libtpu: 0.0.40
codegen_flags: <defaults>
</compile_context>

<pallas_src>
import functools

import jax
import jax.numpy as jnp
from jax.experimental import pallas as pl
from jax.experimental.pallas import tpu as pltpu

HIDDEN = 64
LANE = 128
VMEM_LIMIT = 48 * 1024 * 1024  # < physical VMEM on v5e/v6e/v7x


def _round_up(n, m):
    return ((n + m - 1) // m) * m


# --------------------------------------------------------------------------- #
# Kernels
# --------------------------------------------------------------------------- #
def gcn_conv_kernel(a_ref, drow_ref, dcol_ref, x_ref, w_ref, b_ref, out_ref,
                    *, apply_relu):
    # a_ref : (TN, Np)  bf16 binary adjacency (self loops included), row tile
    # drow  : (TN, 1)   f32  D^-1/2 for the rows of this tile
    # dcol  : (1,  Np)  f32  D^-1/2 for all columns (resident)
    # x_ref : (Np, Fp)  bf16 node features (resident)
    # w_ref : (Fp, Hp)  bf16 conv weight (resident), b_ref: (1, Hp) f32
    a_hat = (a_ref[...].astype(jnp.float32) * drow_ref[...] * dcol_ref[...]
             ).astype(jnp.bfloat16)
    # (A_hat @ X) @ W == A_hat @ (X @ W); this ordering has no cross-tile
    # redundant work when only rows of A_hat are tiled.
    agg = jnp.dot(a_hat, x_ref[...], preferred_element_type=jnp.float32)
    h = jnp.dot(agg.astype(jnp.bfloat16), w_ref[...],
                preferred_element_type=jnp.float32) + b_ref[...]
    if apply_relu:
        h = jnp.maximum(h, 0.0)
    out_ref[...] = h.astype(out_ref.dtype)


def pool_lin_kernel(p_ref, h_ref, wl_ref, bl_ref, out_ref, acc_ref):
    # p_ref : (G, TN) bf16 mean-pool tile, h_ref: (TN, Hp) bf16
    # wl_ref: (Hp, Cp) bf16 resident, bl_ref: (1, Cp) f32, acc_ref: (G, Hp) f32
    k = pl.program_id(0)

    @pl.when(k == 0)
    def _():
        acc_ref[...] = jnp.zeros_like(acc_ref)

    acc_ref[...] += jnp.dot(p_ref[...], h_ref[...],
                            preferred_element_type=jnp.float32)

    @pl.when(k == pl.num_programs(0) - 1)
    def _():
        # dropout(p=0.5) is identity in eval mode; lin: pooled @ Wlin + blin
        out_ref[...] = (jnp.dot(acc_ref[...].astype(jnp.bfloat16), wl_ref[...],
                                preferred_element_type=jnp.float32)
                        + bl_ref[...])


# --------------------------------------------------------------------------- #
# pallas_call wrappers
# --------------------------------------------------------------------------- #
def _gcn_conv(a_bin, drow, dcol, x_pad, w_pad, b_pad, tn, apply_relu):
    np_, fp = x_pad.shape
    hp = w_pad.shape[1]
    grid = (np_ // tn,)
    kernel = functools.partial(gcn_conv_kernel, apply_relu=apply_relu)
    flops = 2 * np_ * np_ * fp + 2 * np_ * fp * hp
    bytes_acc = 2 * (np_ * np_ + np_ * fp + fp * hp + np_ * hp) + 4 * 2 * np_
    return pl.pallas_call(
        kernel,
        out_shape=jax.ShapeDtypeStruct((np_, hp), jnp.bfloat16),
        grid=grid,
        in_specs=[
            pl.BlockSpec((tn, np_), lambda i: (i, 0)),   # A row tile (streamed)
            pl.BlockSpec((tn, 1), lambda i: (i, 0)),     # dinv rows
            pl.BlockSpec((1, np_), lambda i: (0, 0)),    # dinv cols (resident)
            pl.BlockSpec((np_, fp), lambda i: (0, 0)),   # X (resident)
            pl.BlockSpec((fp, hp), lambda i: (0, 0)),    # W (resident)
            pl.BlockSpec((1, hp), lambda i: (0, 0)),     # bias (resident)
        ],
        out_specs=pl.BlockSpec((tn, hp), lambda i: (i, 0)),
        compiler_params=pltpu.CompilerParams(
            dimension_semantics=("parallel",),
            vmem_limit_bytes=VMEM_LIMIT),
        cost_estimate=pl.CostEstimate(flops=flops, transcendentals=0,
                                      bytes_accessed=bytes_acc),
    )(a_bin, drow, dcol, x_pad, w_pad, b_pad)


def _pool_lin(p_mat, h_nodes, wl_pad, bl_pad, tn):
    g, np_ = p_mat.shape
    hp = h_nodes.shape[1]
    cp = wl_pad.shape[1]
    grid = (np_ // tn,)
    flops = 2 * g * np_ * hp + 2 * g * hp * cp
    bytes_acc = 2 * (g * np_ + np_ * hp + hp * cp) + 4 * (cp + g * cp)
    return pl.pallas_call(
        pool_lin_kernel,
        out_shape=jax.ShapeDtypeStruct((g, cp), jnp.float32),
        grid=grid,
        in_specs=[
            pl.BlockSpec((g, tn), lambda k: (0, k)),     # pooling tile
            pl.BlockSpec((tn, hp), lambda k: (k, 0)),    # node features tile
            pl.BlockSpec((hp, cp), lambda k: (0, 0)),    # Wlin (resident)
            pl.BlockSpec((1, cp), lambda k: (0, 0)),     # blin (resident)
        ],
        out_specs=pl.BlockSpec((g, cp), lambda k: (0, 0)),
        scratch_shapes=[pltpu.VMEM((g, hp), jnp.float32)],
        compiler_params=pltpu.CompilerParams(
            dimension_semantics=("arbitrary",),          # reduction axis
            vmem_limit_bytes=VMEM_LIMIT),
        cost_estimate=pl.CostEstimate(flops=flops, transcendentals=0,
                                      bytes_accessed=bytes_acc),
    )(p_mat, h_nodes, wl_pad, bl_pad)


# --------------------------------------------------------------------------- #
# Forward pass
# --------------------------------------------------------------------------- #
def gcn_forward(x, edge_index, batch, params, num_graphs, *, tile_n=256):
    N, F = x.shape
    W1, b1, W2, b2, Wlin, blin = params
    H = W1.shape[1]
    C = Wlin.shape[1]

    # Lane-dense padding of feature dims; row tile multiple of 128 so the
    # pooling tile (G, TILE) is lane-aligned (small graphs -> one full tile).
    fp = _round_up(F, LANE)
    hp = _round_up(H, LANE)
    cp = _round_up(C, LANE)
    n8 = _round_up(N, 8)
    if n8 <= tile_n:
        tn = n8
        np_ = n8
    else:
        tn = _round_up(tile_n, LANE)
        np_ = _round_up(N, tn)

    # Binary adjacency with self loops + symmetric normalization vector.
    # (duplicate edges are summed, matching PyG's scatter-add of edge weights)
    src, dst = edge_index[0], edge_index[1]
    A = jnp.zeros((N, N), jnp.float32).at[dst, src].add(1.0)
    A = A + jnp.eye(N, dtype=jnp.float32)
    deg = jnp.sum(A, axis=1)
    dinv = jnp.where(deg > 0, 1.0 / jnp.sqrt(deg), 0.0)

    a_bin = jnp.zeros((np_, np_), jnp.bfloat16).at[:N, :N].set(A.astype(jnp.bfloat16))
    dinv_p = jnp.zeros((np_,), jnp.float32).at[:N].set(dinv)
    drow = dinv_p.reshape(np_, 1)
    dcol = dinv_p.reshape(1, np_)

    # Mean-pool matrix (zero columns for padded nodes).
    batch_p = jnp.concatenate([batch.astype(jnp.int32),
                               jnp.full((np_ - N,), -1, jnp.int32)])
    onehot = (batch_p[None, :] == jnp.arange(num_graphs)[:, None]).astype(jnp.float32)
    counts = jnp.maximum(jnp.sum(onehot, axis=1, keepdims=True), 1.0)
    p_mat = (onehot / counts).astype(jnp.bfloat16)

    # Zero-pad inputs / weights to lane-dense shapes (exact: pads are zeros).
    x_pad = jnp.zeros((np_, fp), jnp.bfloat16).at[:N, :F].set(x.astype(jnp.bfloat16))
    w1 = jnp.zeros((fp, hp), jnp.bfloat16).at[:F, :H].set(W1.astype(jnp.bfloat16))
    b1p = jnp.zeros((1, hp), jnp.float32).at[0, :H].set(b1)
    w2 = jnp.zeros((hp, hp), jnp.bfloat16).at[:H, :H].set(W2.astype(jnp.bfloat16))
    b2p = jnp.zeros((1, hp), jnp.float32).at[0, :H].set(b2)
    wl = jnp.zeros((hp, cp), jnp.bfloat16).at[:H, :C].set(Wlin.astype(jnp.bfloat16))
    blp = jnp.zeros((1, cp), jnp.float32).at[0, :C].set(blin)

    # conv1 (+ReLU), conv2, then fused global_mean_pool + Linear.
    h1 = _gcn_conv(a_bin, drow, dcol, x_pad, w1, b1p, tn, apply_relu=True)
    h2 = _gcn_conv(a_bin, drow, dcol, h1, w2, b2p, tn, apply_relu=False)
    out = _pool_lin(p_mat, h2, wl, blp, tn)
    return out[:, :C]


def gcn_reference(x, edge_index, batch, params, num_graphs):
    """Pure-JAX f32 reference of the same forward pass."""
    N = x.shape[0]
    src, dst = edge_index[0], edge_index[1]
    A = jnp.zeros((N, N), jnp.float32).at[dst, src].add(1.0) + jnp.eye(N, dtype=jnp.float32)
    deg = jnp.sum(A, axis=1)
    dinv = jnp.where(deg > 0, 1.0 / jnp.sqrt(deg), 0.0)
    a_hat = dinv[:, None] * A * dinv[None, :]
    W1, b1, W2, b2, Wlin, blin = params
    h = jnp.maximum(a_hat @ (x @ W1) + b1, 0.0)
    h = a_hat @ (h @ W2) + b2
    onehot = (batch[None, :] == jnp.arange(num_graphs)[:, None]).astype(jnp.float32)
    pooled = (onehot / jnp.maximum(onehot.sum(1, keepdims=True), 1.0)) @ h
    return pooled @ Wlin + blin


def init_params(key, in_feats, hidden, num_classes):
    k1, k2, k3 = jax.random.split(key, 3)
    W1 = jax.random.normal(k1, (in_feats, hidden), jnp.float32) * (2.0 / (in_feats + hidden)) ** 0.5
    b1 = jnp.zeros((hidden,), jnp.float32)
    W2 = jax.random.normal(k2, (hidden, hidden), jnp.float32) * (2.0 / (2 * hidden)) ** 0.5
    b2 = jnp.zeros((hidden,), jnp.float32)
    Wlin = jax.random.normal(k3, (hidden, num_classes), jnp.float32) * (2.0 / (hidden + num_classes)) ** 0.5
    blin = jnp.zeros((num_classes,), jnp.float32)
    return (W1, b1, W2, b2, Wlin, blin)


if __name__ == "__main__":
    key = jax.random.PRNGKey(0)

    in_feats, num_classes = 8, 4
    n_per, num_graphs = 128, 2          # 2 graphs x 128 nodes -> grid of 2 tiles
    N = n_per * num_graphs

    kx, kp = jax.random.split(key, 2)
    x = jax.random.normal(kx, (N, in_feats), jnp.float32)

    # Deterministic undirected ring within each graph.
    ids = jnp.arange(n_per, dtype=jnp.int32)
    src = jnp.concatenate([ids, ids + n_per])
    dst = jnp.concatenate([(ids + 1) % n_per, (ids + 1) % n_per + n_per])
    edge_index = jnp.stack([jnp.concatenate([src, dst]),
                            jnp.concatenate([dst, src])], axis=0)

    batch = jnp.concatenate([jnp.zeros(n_per, jnp.int32),
                             jnp.ones(n_per, jnp.int32)])

    params = init_params(kp, in_feats, HIDDEN, num_classes)

    out = gcn_forward(x, edge_index, batch, params, num_graphs, tile_n=128)
    jax.block_until_ready(out)
    assert out.shape == (num_graphs, num_classes)

    ref = gcn_reference(x, edge_index, batch, params, num_graphs)
    err = float(jnp.max(jnp.abs(out - ref)))
    assert err < 5e-2, f"max abs err vs f32 reference: {err}"

    print("KERNEL_OK")
</pallas_src>

<mosaic_0001>
module attributes {stable_mosaic.version = 11 : i64} {
  func.func @gcn_conv_kernel(%arg0: i32, %arg1: memref<128x256xbf16, #tpu.memory_space<vmem>>, %arg2: memref<128x1xf32, #tpu.memory_space<vmem>>, %arg3: memref<1x256xf32, #tpu.memory_space<vmem>>, %arg4: memref<256x128xbf16, #tpu.memory_space<vmem>>, %arg5: memref<128x128xbf16, #tpu.memory_space<vmem>>, %arg6: memref<1x128xf32, #tpu.memory_space<vmem>>, %arg7: memref<128x128xbf16, #tpu.memory_space<vmem>>) attributes {dimension_semantics = [#tpu.dimension_semantics<parallel>], iteration_bounds = array<i64: 2>, scalar_prefetch = 0 : i64, scratch_operands = 0 : i64, tpu.core_type = #tpu.core_type<tc>, window_params = [{transform_indices = @transform_0, window_bounds = array<i64: 128, 256>}, {transform_indices = @transform_1, window_bounds = array<i64: 128, 1>}, {pipeline_mode = #tpu.pipeline_mode<synchronous>, transform_indices = @transform_2, window_bounds = array<i64: 1, 256>}, {pipeline_mode = #tpu.pipeline_mode<synchronous>, transform_indices = @transform_3, window_bounds = array<i64: 256, 128>}, {pipeline_mode = #tpu.pipeline_mode<synchronous>, transform_indices = @transform_4, window_bounds = array<i64: 128, 128>}, {pipeline_mode = #tpu.pipeline_mode<synchronous>, transform_indices = @transform_5, window_bounds = array<i64: 1, 128>}, {transform_indices = @transform_6, window_bounds = array<i64: 128, 128>}]} {
    %c0 = arith.constant 0 : index
    %c0_0 = arith.constant 0 : index
    %0 = vector.load %arg1[%c0, %c0_0] : memref<128x256xbf16, #tpu.memory_space<vmem>>, vector<128x256xbf16>
    %1 = arith.extf %0 : vector<128x256xbf16> to vector<128x256xf32>
    %c0_1 = arith.constant 0 : index
    %c0_2 = arith.constant 0 : index
    %2 = vector.load %arg2[%c0_1, %c0_2] : memref<128x1xf32, #tpu.memory_space<vmem>>, vector<128x1xf32>
    %3 = vector.broadcast %2 : vector<128x1xf32> to vector<128x256xf32>
    %4 = arith.mulf %1, %3 : vector<128x256xf32>
    %c0_3 = arith.constant 0 : index
    %c0_4 = arith.constant 0 : index
    %5 = vector.load %arg3[%c0_3, %c0_4] : memref<1x256xf32, #tpu.memory_space<vmem>>, vector<1x256xf32>
    %6 = vector.broadcast %5 : vector<1x256xf32> to vector<128x256xf32>
    %7 = arith.mulf %4, %6 : vector<128x256xf32>
    %8 = arith.truncf %7 : vector<128x256xf32> to vector<128x256xbf16>
    %c0_5 = arith.constant 0 : index
    %c0_6 = arith.constant 0 : index
    %9 = vector.load %arg4[%c0_5, %c0_6] : memref<256x128xbf16, #tpu.memory_space<vmem>>, vector<256x128xbf16>
    %cst = arith.constant dense<0.000000e+00> : vector<128x128xf32>
    %10 = tpu.matmul %8, %9, %cst {dimension_numbers = #tpu.dot_dimension_numbers<[1], [0], [0], [1], [0, 0, 1, 1], [], []>} : vector<128x256xbf16>, vector<256x128xbf16>, vector<128x128xf32> -> vector<128x128xf32>
    %11 = arith.truncf %10 : vector<128x128xf32> to vector<128x128xbf16>
    %c0_7 = arith.constant 0 : index
    %c0_8 = arith.constant 0 : index
    %12 = vector.load %arg5[%c0_7, %c0_8] : memref<128x128xbf16, #tpu.memory_space<vmem>>, vector<128x128xbf16>
    %cst_9 = arith.constant dense<0.000000e+00> : vector<128x128xf32>
    %13 = tpu.matmul %11, %12, %cst_9 {dimension_numbers = #tpu.dot_dimension_numbers<[1], [0], [0], [1], [0, 0, 1, 1], [], []>} : vector<128x128xbf16>, vector<128x128xbf16>, vector<128x128xf32> -> vector<128x128xf32>
    %c0_10 = arith.constant 0 : index
    %c0_11 = arith.constant 0 : index
    %14 = vector.load %arg6[%c0_10, %c0_11] : memref<1x128xf32, #tpu.memory_space<vmem>>, vector<1x128xf32>
    %15 = vector.broadcast %14 : vector<1x128xf32> to vector<128x128xf32>
    %16 = arith.addf %13, %15 : vector<128x128xf32>
    %cst_12 = arith.constant 0.000000e+00 : f32
    %17 = vector.broadcast %cst_12 : f32 to vector<128x128xf32>
    %18 = arith.maximumf %16, %17 : vector<128x128xf32>
    %19 = arith.truncf %18 : vector<128x128xf32> to vector<128x128xbf16>
    %c0_13 = arith.constant 0 : index
    %c0_14 = arith.constant 0 : index
    %20 = vector.load %arg7[%c0_13, %c0_14] : memref<128x128xbf16, #tpu.memory_space<vmem>>, vector<128x128xbf16>
    tpu.vector_store %arg7[%c0_13, %c0_14], %19 {strides = array<i32>} : memref<128x128xbf16, #tpu.memory_space<vmem>>, vector<128x128xbf16>,
    return
  }
  func.func @transform_0(%arg0: i32) -> (i32, i32) {
    %c0_i32 = arith.constant 0 : i32
    %c0_i32_0 = arith.constant 0 : i32
    return %arg0, %c0_i32 : i32, i32
  }
  func.func @transform_1(%arg0: i32) -> (i32, i32) {
    %c0_i32 = arith.constant 0 : i32
    %c0_i32_0 = arith.constant 0 : i32
    return %arg0, %c0_i32 : i32, i32
  }
  func.func @transform_2(%arg0: i32) -> (i32, i32) {
    %c0_i32 = arith.constant 0 : i32
    %c0_i32_0 = arith.constant 0 : i32
    %c0_i32_1 = arith.constant 0 : i32
    return %c0_i32, %c0_i32_0 : i32, i32
  }
  func.func @transform_3(%arg0: i32) -> (i32, i32) {
    %c0_i32 = arith.constant 0 : i32
    %c0_i32_0 = arith.constant 0 : i32
    %c0_i32_1 = arith.constant 0 : i32
    return %c0_i32, %c0_i32_0 : i32, i32
  }
  func.func @transform_4(%arg0: i32) -> (i32, i32) {
    %c0_i32 = arith.constant 0 : i32
    %c0_i32_0 = arith.constant 0 : i32
    %c0_i32_1 = arith.constant 0 : i32
    return %c0_i32, %c0_i32_0 : i32, i32
  }
  func.func @transform_5(%arg0: i32) -> (i32, i32) {
    %c0_i32 = arith.constant 0 : i32
    %c0_i32_0 = arith.constant 0 : i32
    %c0_i32_1 = arith.constant 0 : i32
    return %c0_i32, %c0_i32_0 : i32, i32
  }
  func.func @transform_6(%arg0: i32) -> (i32, i32) {
    %c0_i32 = arith.constant 0 : i32
    %c0_i32_0 = arith.constant 0 : i32
    return %arg0, %c0_i32 : i32, i32
  }
}

</mosaic_0001>

<bundles_post_ra>
// kernel: tpu_custom_call.1
= control target key start
LH: loop header
LB: loop body
LE: loop exit
PB: predicated region body
PF: predicated region fallthrough
CT: control target
= control target key end

     0   :  { %11 = vsyncpa [#allocation3], 0  ;;  %s1890_s0 = inlined_call_operand.vmem [shape: bf16[256,256], index: 0, kind: input, shape index: {}]   ;;  %s1891_s1 = inlined_call_operand.vmem [shape: f32[256,1], index: 1, kind: input, shape index: {}]   ;;  %s1892_s2 = inlined_call_operand.vmem [shape: f32[1,256], index: 2, kind: input, shape index: {}]   ;;  %s1893_s3 = inlined_call_operand.hbm [shape: bf16[256,128], index: 3, kind: input, shape index: {}]   ;;  %s1894_s4 = inlined_call_operand.hbm [shape: bf16[128,128], index: 4, kind: input, shape index: {}]   ;;  %s1895_s5 = inlined_call_operand.vmem [shape: f32[1,128], index: 5, kind: input, shape index: {}]   ;;  %s1896_s6 = inlined_call_operand.hbm [shape: bf16[256,128], index: 6, kind: output, shape index: {}]  }
   0x1   :  { %12 = vsyncpa [#allocation6], 0 }
   0x2   :  { %13 = vsyncpa [#allocation4], 0 }
   0x3   :  { %15 = vsyncpa [#allocation4 + $0x1], 0  ;;  %s1645_s21 = smov 0   ;;  %s1647_s22 = smov 0  }
   0x4   :  { %s1649_s23 = smov 0   ;;  %s1651_s24 = smov 0  }
   0x5 LB: > { %s1666_s25 = sadd.s32 4294967295, %s1600_s24   ;;  %s1152_s26 = sadd.s32 4294967294, %s1600_s24   ;;  %s1600_s24 = sphi %s1651_s24, %s1910_s24   ;;  %s1596_s23 = sphi %s1649_s23, %s1909_s23   ;;  %s1592_s22 = sphi %s1647_s22, %s1908_s22   ;;  %s1588_s21 = sphi %s1645_s21, %s1907_s21  }
   0x6   : > { %s1670_s27 = sadd.s32 1, %s1600_s24   ;;  %s164_s28 = sadd.s32 1, %s1596_s23 }
   0x7   : > { %s161_s29 = ssub.s32 %s1600_s24, %s1670_s27  ;;  %p174_p0 = scmp.ne.s32.totalorder %s1596_s23, %s1592_s22 }
   0x8   : > { %p162_p1 = scmp.eq.s32.totalorder %s161_s29, 0  ;;  %p175_p2 = scmp.eq.s32.totalorder %s1666_s25, 1 }
   0x9   : > { %p180_p3 = scmp.ne.s32.totalorder %s1592_s22, %s1588_s21  ;;  %p181_p4 = scmp.eq.s32.totalorder %s1152_s26, 1 }
   0xa   : > { %s1681_s30 = scalar_select %p162_p1, %s1596_s23, %s164_s28  }
   0xb   : > { %p1683_p5 = por %p175_p2, %p174_p0  ;;  %p1687_p6 = por %p181_p4, %p180_p3 }
   0xc   : > { %p1153_p7 = scmp.ge.s32.totalorder %s1600_s24, 1  ;;  %p188_p8 = scmp.lt.s32.totalorder %s1600_s24, 3 }
   0xd   : > { %s1899_s8 = scalar_select %p1687_p6, 1, 0 }
   0xe   : > { %p1897_p9 = scmp.eq.s32.totalorder %s1666_s25, 0  ;;  %p1694_p10 = pnand %p1153_p7, %p188_p8 }
   0xf   : > { %s1602_s10 = smov [#allocation2]   ;;  %s1603_s13 = smov [#allocation5]  }
  0x10   : > { %s203_s11 = sshll.u32 %s1602_s10, 4  ;;  %p1399_p11 = pneg %p1694_p10  ;;  %s204_s11 = int_to_ptr.vmem [resolvable:$true] %s203_s11 }
  0x11   : > { %s216_s14 = sshll.u32 %s1603_s13, 4  ;;  %s1491_s15 = scalar_lea.vmem %s204_s11, 2048  ;;  %s217_s14 = int_to_ptr.vmem [resolvable:$true] %s216_s14 }
  0x12   : > { %p1702_p12 = pnand %p1897_p9, %p1399_p11  ;;  %p1492_p0 = scmp.ne.s32.totalorder %s204_s11, %s1491_s15 }
  0x13   : > { %p1499_p3 = scmp.lt.s32.totalorder %s204_s11, %s204_s11  ;;  %p1500_p4 = scmp.lt.s32.totalorder %s1491_s15, %s1491_s15 }
  0x14   : > { %p1482_p13 = pneg %p1702_p12 }
  0x15   : > { %p1501_p7 = por %p1500_p4, %p1499_p3 }
  0x16   : > { %p1494_p1 = pnand %p1492_p0, %p1482_p13 }
  0x18   : > { %p1495_p2 = pneg %p1494_p1 }
  0x1a   : > { %p1502_p8 = pnand %p1501_p7, %p1495_p2 }
  0x1c   : > { %1505 = shalt.err (!%p1502_p8)
}
  0x1d   : > { %s1604_s16 = smov 64   ;;  %s1605_s17 = smov 4  }
  0x1e   : > { %1402 = dma.hbm_to_vmem [thread:$0]  (!%p1702_p12), %s1893_s3, 2048, %s204_s11, [#allocation3], %s1604_s16, %s1604_s16, %s1605_s17  }
  0x1f   : > { %s1517_s20 = scalar_lea.vmem %s217_s14, 1024  ;;  %p1525_p9 = scmp.lt.s32.totalorder %s217_s14, %s217_s14 }
  0x20   : > { %p1518_p11 = scmp.ne.s32.totalorder %s217_s14, %s1517_s20  ;;  %p1526_p6 = scmp.lt.s32.totalorder %s1517_s20, %s1517_s20 }
  0x22   : > { %p1520_p0 = pnand %p1518_p11, %p1482_p13  ;;  %p1527_p3 = por %p1526_p6, %p1525_p9 }
  0x24   : > { %p1521_p1 = pneg %p1520_p0 }
  0x26   : > { %p1528_p2 = pnand %p1527_p3, %p1521_p1 }
  0x28   : > { %1531 = shalt.err (!%p1528_p2)
}
  0x29   : > { %1405 = dma.hbm_to_vmem [thread:$0]  (!%p1702_p12), %s1894_s4, 1024, %s217_s14, [#allocation6], %s1604_s16, %s1604_s16, %s1605_s17  }
  0x2a   : > { %254 = sbr.rel (%p1694_p10) target bundleno = 671 (0x29f), region = 44  ;;  %p1902_p4 = scmp.eq.s32.totalorder (!%p1694_p10), %s1666_s25, 0 }
  0x2f   : > { %1575 = dma.done.wait (%p1902_p4), [#allocation3], 2048   ;;  %p1903_p13 = pmov %p1902_p4 }
  0x30   : > { %p1904_p7 = pmov %p1902_p4 }
  0x31   : > { %1577 = vsyncadd (%p1903_p13), [#allocation3], 4294965248 }
  0x32   : > { %1579 = dma.done.wait (%p1904_p7), [#allocation6], 1024   ;;  %p1905_p6 = pmov %p1902_p4 }
  0x33   : > { %s1161_s29 = sshll.u32 %s1666_s25, 4  ;;  %v1606_v0 = vmov 0   ;;  %v1456_v7 = vld [vmem:[#allocation2 + $0x78] sm:$0xff]   ;;  %v1458_v10 = vld [vmem:[#allocation2 + $0x70] sm:$0xff]   ;;  %v1460_v13 = vld [vmem:[#allocation2 + $0x68] sm:$0xff]   ;;  %v487_v37 = vlaneseq  ;;  %s291_s20 = sand.u32 1, %s1592_s22  }
  0x34   : > { %1581 = vsyncadd (%p1905_p6), [#allocation6], 4294966272  ;;  %1455 = vset.pattern.permute.xlu1 %v1606_v0  ;;  %1454 = vset.pattern.permute.xlu0 %v1606_v0  ;;  %p295_p9 = scmp.lt.s32.totalorder %s1161_s29, 31  ;;  %v1457_v8 = vld [vmem:[#allocation2 + $0x38] sm:$0xff]   ;;  %v1459_v12 = vld [vmem:[#allocation2 + $0x30] sm:$0xff]   ;;  %s1160_s26 = sshll.u32 %s291_s20, 6 }
  0x35   : > { %1277 = vmatprep.subr.bf16.mxu0 %v1456_v7  ;;  %v1461_v16 = vld [vmem:[#allocation2 + $0x28] sm:$0xff]   ;;  %v1462_v17 = vld [vmem:[#allocation2 + $0x60] sm:$0xff]   ;;  %v1464_v21 = vld [vmem:[#allocation2 + $0x58] sm:$0xff]   ;;  %v488_v39 = vshrl.u32 %v487_v37, 7  ;;  %s1829_s28 = scalar_lea.vmem [#allocation7], %s1160_s26  ;;  %s1850_s13 = scalar_lea.sflag [#allocation4], %s291_s20 }
  0x36   : > { %s1912_s29 = smov (!%p295_p9, %s1161_s29), 31  ;;  %1278 = vmatpush3.bf16.msra.mxu0 %v1457_v8  ;;  %v1463_v20 = vld [vmem:[#allocation2 + $0x20] sm:$0xff]   ;;  %v1465_v24 = vld [vmem:[#allocation2 + $0x18] sm:$0xff]   ;;  %v1466_v25 = vld [vmem:[#allocation2 + $0x50] sm:$0xff]   ;;  %s1607_s14 = smov [#allocation7]  }
  0x37   : > { %s1212_s9 = sshll.u32 %s1912_s29, 3  ;;  %1279 = vmatprep.subr.bf16.mxu0 %v1458_v10  ;;  %v1467_v28 = vld [vmem:[#allocation2 + $0x10] sm:$0xff]   ;;  %v1468_v29 = vld [vmem:[#allocation2 + $0x48] sm:$0xff]   ;;  %v1470_v31 = vld [vmem:[#allocation2 + $0x40] sm:$0xff]   ;;  %v489_v44 = vsub.s32 0, %v488_v39  ;;  %v493_v45 = vsub.s32 1, %v488_v39 }
  0x38   : > { %s1743_s12 = scalar_lea.vmem %s1891_s1, %s1212_s9  ;;  %v1469_v30 = vld [vmem:[#allocation2 + $0x8] sm:$0xff]   ;;  %v1471_v32 = vld [vmem:[#allocation2] sm:$0xff]   ;;  %v1472_v33 = vld [vmem:[#allocation5 + $0x38] sm:$0xff]   ;;  %s1766_s15 = scalar_lea.vmem %s1890_s0, %s1212_s9 }
  0x39   : > { %v359_v1 = vld [vmem:[%s1743_s12 + $0x10] sm:$0xff]  ;;  %v357_v2 = vld [vmem:[%s1743_s12] sm:$0xff]  ;;  %v360_v3 = vld [vmem:[%s1743_s12 + $0x18] sm:$0xff]  ;;  %1357 = vmatprep.subr.bf16.mxu1 %v1472_v33  ;;  %s1056_s29 = sshll.u32 %s1829_s28, 4  ;;  %s1229_s9 = sshll.u32 %s1666_s25, 10  ;;  %s1839_s29 = int_to_ptr.vmem [resolvable:$true] %s1056_s29 }
  0x3a   : > { %385 = vperm.xlu1 %1455, %v359_v1   ;;  %375 = vperm.xlu0 %1454, %v357_v2   ;;  %v358_v4 = vld [vmem:[%s1743_s12 + $0x8] sm:$0xff]  ;;  %v361_v6 = vld [vmem:[%s1743_s12 + $0x20] sm:$0xff]  ;;  %v364_v9 = vld [vmem:[%s1743_s12 + $0x38] sm:$0xff]  ;;  %s1532_s25 = scalar_lea.vmem %s1839_s29, 1024 }
  0x3b   : > { %v362_v5 = vld [vmem:[%s1743_s12 + $0x28] sm:$0xff]  ;;  %v363_v11 = vld [vmem:[%s1743_s12 + $0x30] sm:$0xff]  ;;  %v365_v15 = vld [vmem:[%s1743_s12 + $0x40] sm:$0xff]  ;;  %1280 = vmatpush3.bf16.msra.mxu0 %v1459_v12  ;;  %1358 = vmatpush3.bf16.msra.mxu1 %v1472_v33  ;;  %p1533_p10 = scmp.ne.s32.totalorder %s1839_s29, %s1532_s25 }
  0x3c   : > { %v366_v14 = vld [vmem:[%s1743_s12 + $0x48] sm:$0xff]  ;;  %1281 = vmatprep.subr.bf16.mxu0 %v1460_v13  ;;  %v368_v18 = vld [vmem:[%s1743_s12 + $0x58] sm:$0xff]  ;;  %v367_v19 = vld [vmem:[%s1743_s12 + $0x50] sm:$0xff] }
  0x3d   : > { %v370_v22 = vld [vmem:[%s1743_s12 + $0x68] sm:$0xff]  ;;  %v369_v23 = vld [vmem:[%s1743_s12 + $0x60] sm:$0xff]  ;;  %v372_v26 = vld [vmem:[%s1743_s12 + $0x78] sm:$0xff]  ;;  %p1534_p12 = pnand %p1533_p10, %p1683_p5 }
  0x3e   : > { %390 = vperm.xlu1 %1455, %v360_v3   ;;  %380 = vperm.xlu0 %1454, %v358_v4   ;;  %v371_v27 = vld [vmem:[%s1743_s12 + $0x70] sm:$0xff]  ;;  %v1474_v35 = vld [vmem:[#allocation5 + $0x28] sm:$0xff]   ;;  %v1475_v36 = vld [vmem:[#allocation5 + $0x20] sm:$0xff]   ;;  %s1844_s12 = scalar_lea.hbm %s1896_s6, %s1229_s9 }
  0x3f   : > { %1282 = vmatpush3.bf16.msra.mxu0 %v1461_v16  ;;  %v1473_v34 = vld [vmem:[#allocation5 + $0x30] sm:$0xff]   ;;  %v309_v40 = vld [vmem:[%s1766_s15] sm:$0xff]  ;;  %v312_v42 = vld [vmem:[%s1766_s15 + $0x18] sm:$0xff]  ;;  %p1535_p8 = pneg %p1534_p12 }
  0x40   : > { %1283 = vmatprep.subr.bf16.mxu0 %v1462_v17  ;;  %1359 = vmatprep.subr.bf16.mxu1 %v1473_v34  ;;  %v311_v38 = vld [vmem:[%s1766_s15 + $0x10] sm:$0xff]  ;;  %v310_v43 = vld [vmem:[%s1766_s15 + $0x8] sm:$0xff]  ;;  %v325_v48 = vunpack.c.l.bf16 %v309_v40  ;;  %v326_v49 = vunpack.c.h.bf16 %v309_v40  ;;  %v485_v50 = vld [vmem:[%s1892_s2] sm:$0x3]  ;;  %v332_v51 = vunpack.c.h.bf16 %v312_v42  ;;  %v331_v4 = vunpack.c.l.bf16 %v312_v42 }
  0x41   : > { %1360 = vmatpush3.bf16.msra.mxu1 %v1473_v34  ;;  %v330_v41 = vunpack.c.h.bf16 %v311_v38  ;;  %v327_v52 = vunpack.c.l.bf16 %v310_v43  ;;  %v328_v53 = vunpack.c.h.bf16 %v310_v43  ;;  %v1775_v55 = vrot.slane %v485_v50, %v489_v44  ;;  %v314_v0 = vld [vmem:[%s1766_s15 + $0x28] sm:$0xff]  ;;  %v313_v1 = vld [vmem:[%s1766_s15 + $0x20] sm:$0xff] }
  0x42   : > { %400 = vperm.xlu1 %1455, %v362_v5   ;;  %395 = vperm.xlu0 %1454, %v361_v6   ;;  %v1777_v56 = vrot.slane %v485_v50, %v493_v45  ;;  %v329_v2 = vunpack.c.l.bf16 %v311_v38  ;;  %v334_v10 = vunpack.c.h.bf16 %v313_v1  ;;  %v318_v39 = vld [vmem:[%s1766_s15 + $0x48] sm:$0xff]  ;;  %v317_v40 = vld [vmem:[%s1766_s15 + $0x40] sm:$0xff] }
  0x43   : > { %1284 = vmatpush3.bf16.msra.mxu0 %v1463_v20  ;;  %1361 = vmatprep.subr.bf16.mxu1 %v1474_v35 }
  0x44   : > { %1285 = vmatprep.subr.bf16.mxu0 %v1464_v21  ;;  %v316_v21 = vld [vmem:[%s1766_s15 + $0x38] sm:$0xff] }
  0x45   : > { %1362 = vmatpush3.bf16.msra.mxu1 %v1474_v35  ;;  %v339_v43 = vunpack.c.l.bf16 %v316_v21 }
  0x46   : > { %410 = vperm.xlu1 %1455, %v364_v9   ;;  %405 = vperm.xlu0 %1454, %v363_v11   ;;  %v336_v9 = vunpack.c.h.bf16 %v314_v0 }
  0x47   : > { %1286 = vmatpush3.bf16.msra.mxu0 %v1465_v24  ;;  %1363 = vmatprep.subr.bf16.mxu1 %v1475_v36 }
  0x48   : > { %1287 = vmatprep.subr.bf16.mxu0 %v1466_v25  ;;  %v335_v25 = vunpack.c.l.bf16 %v314_v0  ;;  %v341_v0 = vunpack.c.l.bf16 %v317_v40 }
  0x49   : > { %1364 = vmatpush3.bf16.msra.mxu1 %v1475_v36 }
  0x4a   : > { %420 = vperm.xlu1 %1455, %v366_v14   ;;  %415 = vperm.xlu0 %1454, %v365_v15  }
  0x4b   : > { %1288 = vmatpush3.bf16.msra.mxu0 %v1467_v28 }
  0x4c   : > { %1289 = vmatprep.subr.bf16.mxu0 %v1468_v29  ;;  %v340_v29 = vunpack.c.h.bf16 %v316_v21 }
  0x4e   : > { %430 = vperm.xlu1 %1455, %v368_v18   ;;  %425 = vperm.xlu0 %1454, %v367_v19  }
  0x4f   : > { %1290 = vmatpush3.bf16.msra.mxu0 %v1469_v30 }
  0x50   : > { %1291 = vmatprep.subr.bf16.mxu0 %v1470_v31 }
  0x52   : > { %440 = vperm.xlu1 %1455, %v370_v22   ;;  %435 = vperm.xlu0 %1454, %v369_v23   ;;  %v315_v22 = vld [vmem:[%s1766_s15 + $0x30] sm:$0xff] }
  0x53   : > { %1292 = vmatpush3.bf16.msra.mxu0 %v1471_v32  ;;  %v338_v30 = vunpack.c.h.bf16 %v315_v22  ;;  %v337_v44 = vunpack.c.l.bf16 %v315_v22 }
  0x56   : > { %450 = vperm.xlu1 %1455, %v372_v26   ;;  %445 = vperm.xlu0 %1454, %v371_v27   ;;  %v333_v26 = vunpack.c.l.bf16 %v313_v1 }
  0xb5   : > { %v386_v46 = vpop.permute.xlu1 %385  ;;  %v376_v47 = vpop.permute.xlu0 %375 }
  0xb6   : > { %v458_v54 = vmul.f32 %v386_v46, %v330_v41  ;;  %v453_v57 = vmul.f32 %v376_v47, %v325_v48  ;;  %v454_v58 = vmul.f32 %v376_v47, %v326_v49  ;;  %v457_v17 = vmul.f32 %v386_v46, %v329_v2 }
  0xb7   : > { %v344_v47 = vunpack.c.h.bf16 %v318_v39  ;;  %v342_v48 = vunpack.c.h.bf16 %v317_v40 }
  0xb8   : > { %v502_v3 = vmul.f32 %v1777_v56, %v458_v54  ;;  %v497_v8 = vmul.f32 %v1775_v55, %v453_v57  ;;  %v498_v11 = vmul.f32 %v1777_v56, %v454_v58  ;;  %v501_v23 = vmul.f32 %v1775_v55, %v457_v17 }
  0xb9   : > { %v391_v59 = vpop.permute.xlu1 %390  ;;  %v381_v60 = vpop.permute.xlu0 %380 }
  0xba   : > { %v460_v61 = vmul.f32 %v391_v59, %v332_v51  ;;  %v455_v62 = vmul.f32 %v381_v60, %v327_v52  ;;  %v456_v63 = vmul.f32 %v381_v60, %v328_v53  ;;  %v459_v18 = vmul.f32 %v391_v59, %v331_v4  ;;  %v320_v59 = vld [vmem:[%s1766_s15 + $0x58] sm:$0xff]  ;;  %v319_v60 = vld [vmem:[%s1766_s15 + $0x50] sm:$0xff] }
  0xbb   : > { %v346_v4 = vunpack.c.h.bf16 %v319_v60  ;;  %v347_v17 = vunpack.c.l.bf16 %v320_v59 }
  0xbc   : > { %v504_v5 = vmul.f32 %v1777_v56, %v460_v61  ;;  %v499_v6 = vmul.f32 %v1775_v55, %v455_v62  ;;  %v500_v7 = vmul.f32 %v1777_v56, %v456_v63  ;;  %v503_v24 = vmul.f32 %v1775_v55, %v459_v18 }
  0xbd   : > { %v401_v12 = vpop.permute.xlu1 %400  ;;  %v396_v13 = vpop.permute.xlu0 %395  ;;  %v343_v63 = vunpack.c.l.bf16 %v318_v39  ;;  %v345_v18 = vunpack.c.l.bf16 %v319_v60 }
  0xbe   : > { %v530_v14 = vpack.c.bf16 %v500_v7, %v498_v11  ;;  %v529_v15 = vpack.c.bf16 %v499_v6, %v497_v8  ;;  %v532_v16 = vpack.c.bf16 %v504_v5, %v502_v3  ;;  %v464_v19 = vmul.f32 %v401_v12, %v336_v9 }
  0xbf   : > { %v462_v20 = vmul.f32 %v396_v13, %v334_v10  ;;  %v463_v33 = vmul.f32 %v401_v12, %v335_v25  ;;  %v461_v34 = vmul.f32 %v396_v13, %v333_v26  ;;  %v531_v35 = vpack.c.bf16 %v503_v24, %v501_v23  ;;  %v322_v13 = vld [vmem:[%s1766_s15 + $0x68] sm:$0xff] }
  0xc0   : > { %705 = vmatprep.mubr.bf16.mxu0 %v530_v14  ;;  %v508_v27 = vmul.f32 %v1777_v56, %v464_v19  ;;  %v348_v3 = vunpack.c.h.bf16 %v320_v59  ;;  %v321_v14 = vld [vmem:[%s1766_s15 + $0x60] sm:$0xff]  ;;  %v352_v21 = vunpack.c.h.bf16 %v322_v13 }
  0xc1   : > { %706 = vmatmul.mubr.bf16.vlgmr.msra.gmra.mxu0 %v529_v15  ;;  %v506_v28 = vmul.f32 %v1777_v56, %v462_v20  ;;  %v411_v31 = vpop.permute.xlu1 %410  ;;  %v406_v32 = vpop.permute.xlu0 %405  ;;  %v507_v41 = vmul.f32 %v1775_v55, %v463_v33  ;;  %v505_v42 = vmul.f32 %v1775_v55, %v461_v34  ;;  %v350_v22 = vunpack.c.h.bf16 %v321_v14 }
  0xc2   : > { %713 = vmatprep.mubr.bf16.mxu0 %v532_v16  ;;  %v468_v36 = vmul.f32 %v411_v31, %v340_v29  ;;  %v466_v37 = vmul.f32 %v406_v32, %v338_v30  ;;  %v467_v51 = vmul.f32 %v411_v31, %v339_v43  ;;  %v465_v52 = vmul.f32 %v406_v32, %v337_v44  ;;  %v324_v31 = vld [vmem:[%s1766_s15 + $0x78] sm:$0xff]  ;;  %v323_v32 = vld [vmem:[%s1766_s15 + $0x70] sm:$0xff]  ;;  %s1536_s15 = sshll.u32 %s1607_s14, 4  ;;  %s1537_s15 = int_to_ptr.vmem [resolvable:$false] %s1536_s15 }
  0xc3   : > { %v534_v38 = vpack.c.bf16 %v508_v27, %v506_v28  ;;  %v533_v53 = vpack.c.bf16 %v507_v41, %v505_v42  ;;  %v356_v39 = vunpack.c.h.bf16 %v324_v31  ;;  %v354_v40 = vunpack.c.h.bf16 %v323_v32  ;;  %s1538_s16 = scalar_lea.vmem %s1537_s15, 2048  ;;  %p1539_p11 = scmp.lt.s32.totalorder %s1839_s29, %s1537_s15 }
  0xc4   : > { %v512_v45 = vmul.f32 %v1777_v56, %v468_v36  ;;  %v510_v46 = vmul.f32 %v1777_v56, %v466_v37  ;;  %v511_v61 = vmul.f32 %v1775_v55, %v467_v51  ;;  %v509_v62 = vmul.f32 %v1775_v55, %v465_v52  ;;  %p1540_p0 = scmp.lt.s32.totalorder %s1538_s16, %s1532_s25 }
  0xc5   : > { %v421_v49 = vpop.permute.xlu1 %420  ;;  %v416_v50 = vpop.permute.xlu0 %415  ;;  %v349_v36 = vunpack.c.l.bf16 %v321_v14  ;;  %v355_v51 = vunpack.c.l.bf16 %v324_v31  ;;  %v353_v52 = vunpack.c.l.bf16 %v323_v32 }
  0xc6   : > { %v472_v54 = vmul.f32 %v421_v49, %v344_v47  ;;  %v470_v57 = vmul.f32 %v416_v50, %v342_v48  ;;  %v536_v58 = vpack.c.bf16 %v512_v45, %v510_v46  ;;  %v471_v7 = vmul.f32 %v421_v49, %v343_v63  ;;  %p1541_p1 = por %p1540_p0, %p1539_p11 }
  0xc7   : > { %v469_v8 = vmul.f32 %v416_v50, %v341_v0  ;;  %v535_v9 = vpack.c.bf16 %v511_v61, %v509_v62  ;;  %v1476_v0 = vld [vmem:[#allocation5 + $0x18] sm:$0xff]  }
  0xc8   : > { %v516_v1 = vmul.f32 %v1777_v56, %v472_v54  ;;  %v514_v2 = vmul.f32 %v1777_v56, %v470_v57  ;;  %v515_v15 = vmul.f32 %v1775_v55, %v471_v7  ;;  %1365 = vmatprep.subr.bf16.mxu1 %v1476_v0  ;;  %p1542_p3 = pnand %p1541_p1, %p1535_p8 }
  0xc9   : > { %714 = vmatmul.mubr.bf16.gmra.mxu0 %v531_v35  ;;  %v431_v5 = vpop.permute.xlu1 %430  ;;  %v426_v6 = vpop.permute.xlu0 %425  ;;  %v513_v16 = vmul.f32 %v1775_v55, %v469_v8  ;;  %v351_v35 = vunpack.c.l.bf16 %v322_v13  ;;  %1366 = vmatpush3.bf16.msra.mxu1 %v1476_v0 }
  0xca   : > { %721 = vmatprep.mubr.bf16.mxu0 %v534_v38  ;;  %v476_v10 = vmul.f32 %v431_v5, %v348_v3  ;;  %v474_v11 = vmul.f32 %v426_v6, %v346_v4  ;;  %v538_v12 = vpack.c.bf16 %v516_v1, %v514_v2  ;;  %v475_v25 = vmul.f32 %v431_v5, %v347_v17  ;;  %v1477_v1 = vld [vmem:[#allocation5 + $0x10] sm:$0xff]   ;;  %v1478_v2 = vld [vmem:[#allocation5 + $0x8] sm:$0xff]  }
  0xcb   : > { %v473_v26 = vmul.f32 %v426_v6, %v345_v18  ;;  %v537_v27 = vpack.c.bf16 %v515_v15, %v513_v16  ;;  %1367 = vmatprep.subr.bf16.mxu1 %v1477_v1 }
  0xcc   : > { %v520_v19 = vmul.f32 %v1777_v56, %v476_v10  ;;  %v518_v20 = vmul.f32 %v1777_v56, %v474_v11  ;;  %v519_v33 = vmul.f32 %v1775_v55, %v475_v25 }
  0xcd   : > { %v441_v23 = vpop.permute.xlu1 %440  ;;  %v436_v24 = vpop.permute.xlu0 %435  ;;  %v517_v34 = vmul.f32 %v1775_v55, %v473_v26  ;;  %1368 = vmatpush3.bf16.msra.mxu1 %v1477_v1 }
  0xce   : > { %v480_v28 = vmul.f32 %v441_v23, %v352_v21  ;;  %v478_v29 = vmul.f32 %v436_v24, %v350_v22  ;;  %v540_v30 = vpack.c.bf16 %v520_v19, %v518_v20  ;;  %v479_v43 = vmul.f32 %v441_v23, %v351_v35  ;;  %1369 = vmatprep.subr.bf16.mxu1 %v1478_v2 }
  0xcf   : > { %v477_v44 = vmul.f32 %v436_v24, %v349_v36  ;;  %v539_v45 = vpack.c.bf16 %v519_v33, %v517_v34 }
  0xd0   : > { %v524_v37 = vmul.f32 %v1777_v56, %v480_v28  ;;  %v522_v38 = vmul.f32 %v1777_v56, %v478_v29  ;;  %v523_v49 = vmul.f32 %v1775_v55, %v479_v43 }
  0xd1   : > { %722 = vmatmul.mubr.bf16.gmra.mxu0 %v533_v53  ;;  %v451_v41 = vpop.permute.xlu1 %450  ;;  %v446_v42 = vpop.permute.xlu0 %445  ;;  %v521_v50 = vmul.f32 %v1775_v55, %v477_v44  ;;  %1370 = vmatpush3.bf16.msra.mxu1 %v1478_v2 }
  0xd2   : > { %729 = vmatprep.mubr.bf16.mxu0 %v536_v58  ;;  %v484_v46 = vmul.f32 %v451_v41, %v356_v39  ;;  %v482_v47 = vmul.f32 %v446_v42, %v354_v40  ;;  %v542_v48 = vpack.c.bf16 %v524_v37, %v522_v38  ;;  %v483_v57 = vmul.f32 %v451_v41, %v355_v51 }
  0xd3   : > { %v481_v58 = vmul.f32 %v446_v42, %v353_v52  ;;  %v541_v59 = vpack.c.bf16 %v523_v49, %v521_v50 }
  0xd4   : > { %v528_v53 = vmul.f32 %v1777_v56, %v484_v46  ;;  %v526_v54 = vmul.f32 %v1777_v56, %v482_v47  ;;  %v527_v61 = vmul.f32 %v1775_v55, %v483_v57  ;;  %v1479_v56 = vld [vmem:[#allocation5] sm:$0xff]  }
  0xd5   : > { %v525_v62 = vmul.f32 %v1775_v55, %v481_v58  ;;  %1371 = vmatprep.subr.bf16.mxu1 %v1479_v56 }
  0xd6   : > { %v544_v60 = vpack.c.bf16 %v528_v53, %v526_v54  ;;  %1372 = vmatpush3.bf16.msra.mxu1 %v1479_v56 }
  0xd7   : > { %v543_v63 = vpack.c.bf16 %v527_v61, %v525_v62  ;;  %v1182_v61 = vld [vmem:[%s1895_s5] ss:$0 sm:$0xff] }
  0xd9   : > { %730 = vmatmul.mubr.bf16.gmra.mxu0 %v535_v9 }
  0xda   : > { %737 = vmatprep.mubr.bf16.mxu0 %v538_v12 }
  0xe1   : > { %738 = vmatmul.mubr.bf16.gmra.mxu0 %v537_v27 }
  0xe2   : > { %745 = vmatprep.mubr.bf16.mxu0 %v540_v30 }
  0xe9   : > { %746 = vmatmul.mubr.bf16.gmra.mxu0 %v539_v45 }
  0xea   : > { %753 = vmatprep.mubr.bf16.mxu0 %v542_v48 }
  0xf1   : > { %754 = vmatmul.mubr.bf16.gmra.mxu0 %v541_v59 }
  0xf2   : > { %761 = vmatprep.mubr.bf16.mxu0 %v544_v60 }
  0xf9   : > { %762 = vmatmul.mubr.bf16.gmra.mxu0 %v543_v63 }
 0x181   : > { %v1293_v3 = vpop.f32.mrf.mxu0 }
 0x183   : > { %v1294_v4 = vpop.f32.mrf.mxu0 }
 0x184   : > { %v1295_v7 = vadd.f32 %v1294_v4, %v1293_v3 }
 0x185   : > { %v1296_v5 = vpop.f32.mrf.mxu0 }
 0x187   : > { %v1297_v6 = vpop.f32.mrf.mxu0 }
 0x188   : > { %v1298_v55 = vadd.f32 %v1297_v6, %v1296_v5 }
 0x189   : > { %v1299_v8 = vpop.f32.mrf.mxu0 }
 0x18a   : > { %v770_v9 = vpack.c.bf16 %v1298_v55, %v1295_v7 }
 0x18b   : > { %v1300_v10 = vpop.f32.mrf.mxu0 }
 0x18c   : > { %1373 = vmatprep.mubr.bf16.mxu1 %v770_v9  ;;  %v1301_v13 = vadd.f32 %v1300_v10, %v1299_v8 }
 0x18d   : > { %v1302_v11 = vpop.f32.mrf.mxu0 }
 0x18f   : > { %v1303_v12 = vpop.f32.mrf.mxu0 }
 0x190   : > { %v1304_v14 = vadd.f32 %v1303_v12, %v1302_v11 }
 0x191   : > { %v1305_v15 = vpop.f32.mrf.mxu0 }
 0x192   : > { %v771_v16 = vpack.c.bf16 %v1304_v14, %v1301_v13 }
 0x193   : > { %v1306_v17 = vpop.f32.mrf.mxu0 }
 0x194   : > { %1374 = vmatmul.mubr.bf16.vlgmr.msra.gmra.mxu1 %v771_v16  ;;  %v1307_v20 = vadd.f32 %v1306_v17, %v1305_v15 }
 0x195   : > { %v1308_v18 = vpop.f32.mrf.mxu0 }
 0x197   : > { %v1309_v19 = vpop.f32.mrf.mxu0 }
 0x198   : > { %v1310_v21 = vadd.f32 %v1309_v19, %v1308_v18 }
 0x199   : > { %v1311_v22 = vpop.f32.mrf.mxu0 }
 0x19a   : > { %v772_v23 = vpack.c.bf16 %v1310_v21, %v1307_v20 }
 0x19b   : > { %v1312_v24 = vpop.f32.mrf.mxu0 }
 0x19c   : > { %1377 = vmatprep.mubr.bf16.mxu1 %v772_v23  ;;  %v1313_v27 = vadd.f32 %v1312_v24, %v1311_v22 }
 0x19d   : > { %v1314_v25 = vpop.f32.mrf.mxu0 }
 0x19f   : > { %v1315_v26 = vpop.f32.mrf.mxu0 }
 0x1a0   : > { %v1316_v28 = vadd.f32 %v1315_v26, %v1314_v25 }
 0x1a1   : > { %v1317_v29 = vpop.f32.mrf.mxu0 }
 0x1a2   : > { %v773_v30 = vpack.c.bf16 %v1316_v28, %v1313_v27 }
 0x1a3   : > { %v1318_v31 = vpop.f32.mrf.mxu0 }
 0x1a4   : > { %1378 = vmatmul.mubr.bf16.gmra.mxu1 %v773_v30  ;;  %v1319_v34 = vadd.f32 %v1318_v31, %v1317_v29 }
 0x1a5   : > { %v1320_v32 = vpop.f32.mrf.mxu0 }
 0x1a7   : > { %v1321_v33 = vpop.f32.mrf.mxu0 }
 0x1a8   : > { %v1322_v35 = vadd.f32 %v1321_v33, %v1320_v32 }
 0x1a9   : > { %v1323_v36 = vpop.f32.mrf.mxu0 }
 0x1aa   : > { %v774_v37 = vpack.c.bf16 %v1322_v35, %v1319_v34 }
 0x1ab   : > { %v1324_v38 = vpop.f32.mrf.mxu0 }
 0x1ac   : > { %1381 = vmatprep.mubr.bf16.mxu1 %v774_v37  ;;  %v1325_v41 = vadd.f32 %v1324_v38, %v1323_v36 }
 0x1ad   : > { %v1326_v39 = vpop.f32.mrf.mxu0 }
 0x1af   : > { %v1327_v40 = vpop.f32.mrf.mxu0 }
 0x1b0   : > { %v1328_v42 = vadd.f32 %v1327_v40, %v1326_v39 }
 0x1b1   : > { %v1329_v43 = vpop.f32.mrf.mxu0 }
 0x1b2   : > { %v775_v44 = vpack.c.bf16 %v1328_v42, %v1325_v41 }
 0x1b3   : > { %v1330_v45 = vpop.f32.mrf.mxu0 }
 0x1b4   : > { %1382 = vmatmul.mubr.bf16.gmra.mxu1 %v775_v44  ;;  %v1331_v48 = vadd.f32 %v1330_v45, %v1329_v43 }
 0x1b5   : > { %v1332_v46 = vpop.f32.mrf.mxu0 }
 0x1b7   : > { %v1333_v47 = vpop.f32.mrf.mxu0 }
 0x1b8   : > { %v1334_v49 = vadd.f32 %v1333_v47, %v1332_v46 }
 0x1b9   : > { %v1335_v50 = vpop.f32.mrf.mxu0 }
 0x1ba   : > { %v776_v51 = vpack.c.bf16 %v1334_v49, %v1331_v48 }
 0x1bb   : > { %v1336_v52 = vpop.f32.mrf.mxu0 }
 0x1bc   : > { %1385 = vmatprep.mubr.bf16.mxu1 %v776_v51  ;;  %v1337_v57 = vadd.f32 %v1336_v52, %v1335_v50 }
 0x1bd   : > { %v1338_v53 = vpop.f32.mrf.mxu0 }
 0x1bf   : > { %v1339_v54 = vpop.f32.mrf.mxu0 }
 0x1c0   : > { %v1340_v58 = vadd.f32 %v1339_v54, %v1338_v53 }
 0x1c2   : > { %v777_v59 = vpack.c.bf16 %v1340_v58, %v1337_v57 }
 0x1c4   : > { %1386 = vmatmul.mubr.bf16.gmra.mxu1 %v777_v59 }
 0x254   : > { %v1375_v60 = vpop.f32.mrf.mxu1 }
 0x255   : > { %v892_v63 = vadd.f32 %v1375_v60, %v1182_v61 }
 0x256   : > { %v883_v62 = vpop.f32.mrf.mxu1 }
 0x257   : > { %v884_v1 = vadd.f32 %v1182_v61, %v883_v62  ;;  %v948_v3 = vmax.f32 %v892_v63, 0.0 }
 0x258   : > { %v1376_v0 = vpop.f32.mrf.mxu1 }
 0x259   : > { %v895_v2 = vadd.f32 %v1376_v0, %v1182_v61  ;;  %v946_v6 = vmax.f32 %v884_v1, 0.0 }
 0x25a   : > { %v886_v56 = vpop.f32.mrf.mxu1 }
 0x25b   : > { %v949_v4 = vmax.f32 %v895_v2, 0.0  ;;  %v887_v5 = vadd.f32 %v1182_v61, %v886_v56 }
 0x25d   : > { %v1238_v7 = vpack.c.bf16 %v949_v4, %v948_v3  ;;  %v947_v55 = vmax.f32 %v887_v5, 0.0 }
 0x25f   : > { %1270 = vst [vmem:[%s1829_s28 + $0x8] sm:$0xff] %v1238_v7   ;;  %v1233_v8 = vpack.c.bf16 %v947_v55, %v946_v6 }
 0x261   : > { %1234 = vst [vmem:[%s1829_s28] sm:$0xff] %v1233_v8  }
 0x264   : > { %v1379_v9 = vpop.f32.mrf.mxu1 }
 0x265   : > { %v908_v11 = vadd.f32 %v1379_v9, %v1182_v61 }
 0x266   : > { %v899_v10 = vpop.f32.mrf.mxu1 }
 0x267   : > { %v900_v13 = vadd.f32 %v1182_v61, %v899_v10  ;;  %v952_v16 = vmax.f32 %v908_v11, 0.0 }
 0x268   : > { %v1380_v12 = vpop.f32.mrf.mxu1 }
 0x269   : > { %v911_v14 = vadd.f32 %v1380_v12, %v1182_v61  ;;  %v950_v19 = vmax.f32 %v900_v13, 0.0 }
 0x26a   : > { %v902_v15 = vpop.f32.mrf.mxu1 }
 0x26b   : > { %v953_v17 = vmax.f32 %v911_v14, 0.0  ;;  %v903_v18 = vadd.f32 %v1182_v61, %v902_v15 }
 0x26d   : > { %v1248_v20 = vpack.c.bf16 %v953_v17, %v952_v16  ;;  %v951_v21 = vmax.f32 %v903_v18, 0.0 }
 0x26f   : > { %1272 = vst [vmem:[%s1829_s28 + $0x18] sm:$0xff] %v1248_v20   ;;  %v1243_v22 = vpack.c.bf16 %v951_v21, %v950_v19 }
 0x271   : > { %1271 = vst [vmem:[%s1829_s28 + $0x10] sm:$0xff] %v1243_v22  }
 0x274   : > { %v1383_v23 = vpop.f32.mrf.mxu1 }
 0x275   : > { %v924_v25 = vadd.f32 %v1383_v23, %v1182_v61 }
 0x276   : > { %v915_v24 = vpop.f32.mrf.mxu1 }
 0x277   : > { %v916_v27 = vadd.f32 %v1182_v61, %v915_v24  ;;  %v956_v30 = vmax.f32 %v924_v25, 0.0 }
 0x278   : > { %v1384_v26 = vpop.f32.mrf.mxu1 }
 0x279   : > { %v927_v28 = vadd.f32 %v1384_v26, %v1182_v61  ;;  %v954_v33 = vmax.f32 %v916_v27, 0.0 }
 0x27a   : > { %v918_v29 = vpop.f32.mrf.mxu1 }
 0x27b   : > { %v957_v31 = vmax.f32 %v927_v28, 0.0  ;;  %v919_v32 = vadd.f32 %v1182_v61, %v918_v29 }
 0x27d   : > { %v1258_v34 = vpack.c.bf16 %v957_v31, %v956_v30  ;;  %v955_v35 = vmax.f32 %v919_v32, 0.0 }
 0x27f   : > { %1274 = vst [vmem:[%s1829_s28 + $0x28] sm:$0xff] %v1258_v34   ;;  %v1253_v36 = vpack.c.bf16 %v955_v35, %v954_v33 }
 0x281   : > { %1273 = vst [vmem:[%s1829_s28 + $0x20] sm:$0xff] %v1253_v36  }
 0x284   : > { %v1387_v37 = vpop.f32.mrf.mxu1 }
 0x285   : > { %v940_v39 = vadd.f32 %v1387_v37, %v1182_v61 }
 0x286   : > { %v931_v38 = vpop.f32.mrf.mxu1 }
 0x287   : > { %v932_v41 = vadd.f32 %v1182_v61, %v931_v38  ;;  %v960_v44 = vmax.f32 %v940_v39, 0.0 }
 0x288   : > { %v1388_v40 = vpop.f32.mrf.mxu1 }
 0x289   : > { %v943_v42 = vadd.f32 %v1388_v40, %v1182_v61  ;;  %v958_v47 = vmax.f32 %v932_v41, 0.0 }
 0x28a   : > { %v934_v43 = vpop.f32.mrf.mxu1 }
 0x28b   : > { %v961_v45 = vmax.f32 %v943_v42, 0.0  ;;  %v935_v46 = vadd.f32 %v1182_v61, %v934_v43 }
 0x28d   : > { %v1268_v48 = vpack.c.bf16 %v961_v45, %v960_v44  ;;  %v959_v49 = vmax.f32 %v935_v46, 0.0 }
 0x28f   : > { %1276 = vst [vmem:[%s1829_s28 + $0x38] sm:$0xff] %v1268_v48   ;;  %v1263_v50 = vpack.c.bf16 %v959_v49, %v958_v47 }
 0x291   : > { %1275 = vst [vmem:[%s1829_s28 + $0x30] sm:$0xff] %v1263_v50  }
 0x292   : > { %1545 = shalt.err (!%p1542_p3)
}
 0x293   : > { %s1546_s17 = scalar_lea.hbm %s1844_s12, 1024  ;;  %s1550_s20 = scalar_lea.hbm %s1896_s6, 2048 }
 0x294   : > { %p1547_p2 = scmp.ne.s32.totalorder %s1844_s12, %s1546_s17  ;;  %p1551_p7 = scmp.lt.s32.totalorder %s1844_s12, %s1896_s6 }
 0x295   : > { %p1552_p6 = scmp.lt.s32.totalorder %s1550_s20, %s1546_s17 }
 0x296   : > { %p1548_p4 = pnand %p1547_p2, %p1683_p5 }
 0x297   : > { %p1553_p9 = por %p1552_p6, %p1551_p7 }
 0x298   : > { %p1549_p13 = pneg %p1548_p4 }
 0x29a   : > { %p1554_p10 = pnand %p1553_p9, %p1549_p13 }
 0x29c   : > { %1557 = shalt.err (!%p1554_p10)
}
 0x29d   : > { %s1608_s9 = smov 64   ;;  %s1609_s10 = smov 4  }
 0x29e   : > { %1397 = dma.vmem_to_hbm [thread:$0]  (%p1683_p5), %s1839_s29, 1024, %s1844_s12, %s1850_s13, %s1608_s9, %s1608_s9, %s1609_s10  }
 0x29f PF: > { %p1414_p12 = scmp.ge.s32.totalorder %s1600_s24, 2  ;;  %s1071_s11 = sand.u32 1, %s1588_s21  }
 0x2a0   : > { %p1906_p8 = scmp.ne.s32.totalorder %s1899_s8, 0  ;;  %s1072_s25 = scalar_lea.sflag [#allocation4], %s1071_s11 }
 0x2a2   : > { %p1407_p11 = pnand %p1414_p12, %p1906_p8 }
 0x2a4   : > { %p1408_p0 = pneg %p1407_p11 }
 0x2a6   : > { %1583 = dma.done.wait (%p1408_p0), %s1072_s25, 1024  }
 0x2a7   : > { %1585 = vsyncadd (%p1408_p0), %s1072_s25, 4294966272  ;;  %p18_p1 = scmp.ge.s32.totalorder %s1670_s27, 4   ;;  %s1907_s21 = smov %s1592_s22 }
 0x2a8   : > { %s1908_s22 = smov %s1596_s23  ;;  %s1909_s23 = smov %s1681_s30 }
 0x2a9   : > { %s1910_s24 = smov %s1670_s27  ;;  %20 = sbr.rel (!%p18_p1) target bundleno = 5 (0x5), region = 91 }
 0x2ae   :  { %1077 = vsyncpa [#allocation3], 1 }
 0x2af   :  { %1079 = vsyncpa [#allocation3 + $0x1], 1 }
 0x2b0   :  { %1080 = vsyncpa [#allocation6], 1 }
 0x2b1   :  { %1081 = vsyncpa [#allocation4], 1 }
 0x2b2   :  { %1083 = vsyncpa [#allocation4 + $0x1], 1 }

</bundles_post_ra>
